<compile_context>
chip_gen: v5e
topology: v5e:2x2
jax: 0.10.0
libtpu: 0.0.40
codegen_flags: <defaults>
</compile_context>

<pallas_src>
import functools

import jax
import jax.numpy as jnp
from jax.experimental import pallas as pl
from jax.experimental.pallas import tpu as pltpu


def _soft_dice_kernel(m1_ref, m2_ref, out_ref, inter_acc, s12_acc, *,
                      d, dc, n_chunks, n_lane_slices):
    """Grid: (batch tiles [parallel], feature chunks [arbitrary reduction])."""
    k = pl.program_id(1)
    tn = inter_acc.shape[0]

    @pl.when(k == 0)
    def _():
        inter_acc[...] = jnp.zeros_like(inter_acc)
        s12_acc[...] = jnp.zeros_like(s12_acc)

    # Only slices that can actually run past D (ragged tail of the last chunk)
    # pay for a lane mask; everything else is straight VPU work.
    tail_start = (n_chunks - 1) * dc
    lane = None
    if tail_start + n_lane_slices * 128 > d:
        lane = jax.lax.broadcasted_iota(jnp.int32, (tn, 128), 1)

    inter_part = jnp.zeros((tn, 128), jnp.float32)
    s12_part = jnp.zeros((tn, 128), jnp.float32)
    for j in range(n_lane_slices):
        a = m1_ref[:, j * 128:(j + 1) * 128].astype(jnp.float32)
        b = m2_ref[:, j * 128:(j + 1) * 128].astype(jnp.float32)
        if tail_start + (j + 1) * 128 > d:
            # Dynamic column index: automatically all-valid for k < last chunk.
            col = k * dc + j * 128 + lane
            valid = col < d
            a = jnp.where(valid, a, 0.0)
            b = jnp.where(valid, b, 0.0)
        inter_part += a * b
        s12_part += a + b

    inter_acc[...] += inter_part
    s12_acc[...] += s12_part

    @pl.when(k == n_chunks - 1)
    def _():
        inter = jnp.sum(inter_acc[...], axis=1, keepdims=True)
        s12 = jnp.sum(s12_acc[...], axis=1, keepdims=True)
        out_ref[...] = 2.0 * (inter + 1.0) / (s12 + 1.0)


def soft_dice_loss(pred, target, *, max_chunk=16384, vmem_budget_bytes=16 << 20):
    """pred, target: same-shape arrays, leading dim = batch. Returns f32 loss."""
    assert pred.shape == target.shape
    n = pred.shape[0]

    # Flatten exactly as .view(num, -1) does (row-major); keep native dtypes
    # (cast to f32 happens inside the kernel, after the load).
    m1 = pred.reshape(n, -1)
    m2 = target.reshape(n, -1)
    if m1.dtype == jnp.bool_:
        m1 = m1.astype(jnp.float32)
    if m2.dtype == jnp.bool_:
        m2 = m2.astype(jnp.float32)
    d = m1.shape[1]

    itemsize = max(m1.dtype.itemsize, m2.dtype.itemsize)
    d128 = pl.cdiv(d, 128) * 128
    # 2 inputs x 2 pipeline buffers of (tn, dc) elements must fit the budget.
    budget_elems = max(1, vmem_budget_bytes // (2 * 2 * itemsize))

    # Feature chunk: largest 128-multiple that fits with an 8-row batch tile,
    # capped by the (128-rounded) feature dim and max_chunk.
    dc = min(max_chunk, d128, max(128, (budget_elems // 8) // 128 * 128))
    n_chunks = pl.cdiv(d, dc)
    n_lane_slices = dc // 128

    # Batch tile: whole batch if tiny; otherwise sublane-aligned tiles.  When
    # the full feature dim fits in one chunk, grow the batch tile (within the
    # same VMEM budget) so per-grid-step overhead is amortized, but keep at
    # least two batch tiles so the "parallel" axis can use both TensorCores.
    if n <= 8:
        tn = n
    elif n_chunks == 1:
        tn_budget = max(8, (budget_elems // dc) // 8 * 8)
        tn_half = max(8, pl.cdiv(pl.cdiv(n, 2), 8) * 8)
        tn = min(tn_budget, tn_half, 512)
    else:
        tn = 8
    n_btiles = pl.cdiv(n, tn)

    cost = pl.CostEstimate(
        flops=3 * n * d,                       # mul + 2 adds per element
        transcendentals=0,
        bytes_accessed=2 * n * d * itemsize + n * 4,
    )

    scores = pl.pallas_call(
        functools.partial(_soft_dice_kernel, d=d, dc=dc,
                          n_chunks=n_chunks, n_lane_slices=n_lane_slices),
        out_shape=jax.ShapeDtypeStruct((n, 1), jnp.float32),
        grid_spec=pltpu.PrefetchScalarGridSpec(
            num_scalar_prefetch=0,
            grid=(n_btiles, n_chunks),
            in_specs=[
                pl.BlockSpec((tn, dc), lambda b, k: (b, k)),
                pl.BlockSpec((tn, dc), lambda b, k: (b, k)),
            ],
            out_specs=pl.BlockSpec((tn, 1), lambda b, k: (b, 0)),
            scratch_shapes=[
                pltpu.VMEM((tn, 128), jnp.float32),  # lane-partials of sum(m1*m2)
                pltpu.VMEM((tn, 128), jnp.float32),  # lane-partials of sum(m1+m2)
            ],
        ),
        compiler_params=pltpu.CompilerParams(
            dimension_semantics=("parallel", "arbitrary"),
            vmem_limit_bytes=32 * 1024 * 1024,
        ),
        cost_estimate=cost,
    )(m1, m2)

    return 1.0 - jnp.sum(scores) / n


def _soft_dice_loss_ref(pred, target):
    num = pred.shape[0]
    m1 = pred.reshape(num, -1).astype(jnp.float32)
    m2 = target.reshape(num, -1).astype(jnp.float32)
    inter = (m1 * m2).sum(axis=1)
    score = 2.0 * (inter + 1.0) / (m1.sum(axis=1) + m2.sum(axis=1) + 1.0)
    return 1.0 - score.sum() / num


if __name__ == "__main__":
    key = jax.random.PRNGKey(0)
    k1, k2 = jax.random.split(key)

    # Small NCHW example: batch=2, channels=4, spatial=16x16 (D = 1024).
    pred = jax.nn.sigmoid(jax.random.normal(k1, (2, 4, 16, 16), dtype=jnp.float32))
    target = (jax.random.uniform(k2, (2, 4, 16, 16)) > 0.5).astype(jnp.float32)

    loss = jax.block_until_ready(soft_dice_loss(pred, target))
    ref = _soft_dice_loss_ref(pred, target)
    assert jnp.allclose(loss, ref, rtol=1e-5, atol=1e-5), (loss, ref)

    # Multi-chunk reduction path (forces 4 feature chunks on the same data).
    loss_mc = jax.block_until_ready(soft_dice_loss(pred, target, max_chunk=256))
    assert jnp.allclose(loss_mc, ref, rtol=1e-5, atol=1e-5), (loss_mc, ref)

    # Ragged feature dim (D = 300, not a multiple of 128): in-kernel tail mask.
    k3, k4 = jax.random.split(k2)
    pred_r = jax.nn.sigmoid(jax.random.normal(k3, (3, 3, 10, 10), dtype=jnp.float32))
    target_r = (jax.random.uniform(k4, (3, 3, 10, 10)) > 0.5).astype(jnp.float32)
    loss_r = jax.block_until_ready(soft_dice_loss(pred_r, target_r))
    ref_r = _soft_dice_loss_ref(pred_r, target_r)
    assert jnp.allclose(loss_r, ref_r, rtol=1e-5, atol=1e-5), (loss_r, ref_r)

    # Ragged tail + multiple chunks combined.
    loss_rm = jax.block_until_ready(soft_dice_loss(pred_r, target_r, max_chunk=128))
    assert jnp.allclose(loss_rm, ref_r, rtol=1e-5, atol=1e-5), (loss_rm, ref_r)

    # Larger batch / small D: exercises the grown batch tile + partial tile.
    k5, k6 = jax.random.split(k4)
    pred_b = jax.nn.sigmoid(jax.random.normal(k5, (20, 4, 8, 8), dtype=jnp.float32))
    target_b = (jax.random.uniform(k6, (20, 4, 8, 8)) > 0.5).astype(jnp.float32)
    loss_b = jax.block_until_ready(soft_dice_loss(pred_b, target_b))
    ref_b = _soft_dice_loss_ref(pred_b, target_b)
    assert jnp.allclose(loss_b, ref_b, rtol=1e-5, atol=1e-5), (loss_b, ref_b)

    print("KERNEL_OK")
</pallas_src>

<mosaic_0001>
module attributes {stable_mosaic.version = 11 : i64} {
  func.func @_soft_dice_kernel(%arg0: i32, %arg1: i32, %arg2: memref<2x1024xf32, #tpu.memory_space<vmem>>, %arg3: memref<2x1024xf32, #tpu.memory_space<vmem>>, %arg4: memref<2x1xf32, #tpu.memory_space<vmem>>, %arg5: memref<2x128xf32, #tpu.memory_space<vmem>>, %arg6: memref<2x128xf32, #tpu.memory_space<vmem>>) attributes {dimension_semantics = [#tpu.dimension_semantics<parallel>, #tpu.dimension_semantics<arbitrary>], iteration_bounds = array<i64: 1, 1>, scalar_prefetch = 0 : i64, scratch_operands = 2 : i64, tpu.core_type = #tpu.core_type<tc>, window_params = [{transform_indices = @transform_0, window_bounds = array<i64: 2, 1024>}, {transform_indices = @transform_1, window_bounds = array<i64: 2, 1024>}, {transform_indices = @transform_2, window_bounds = array<i64: 2, 1>}]} {
    %c0_i32 = arith.constant 0 : i32
    %0 = arith.cmpi eq, %arg1, %c0_i32 : i32
    %1 = arith.extui %0 : i1 to i32
    %c0_i32_0 = arith.constant 0 : i32
    %2 = arith.cmpi ne, %1, %c0_i32_0 : i32
    scf.if %2 {
      %cst_36 = arith.constant 0.000000e+00 : f32
      %62 = vector.broadcast %cst_36 : f32 to vector<2x128xf32>
      %c0_37 = arith.constant 0 : index
      %c0_38 = arith.constant 0 : index
      %63 = vector.load %arg5[%c0_37, %c0_38] : memref<2x128xf32, #tpu.memory_space<vmem>>, vector<2x128xf32>
      tpu.vector_store %arg5[%c0_37, %c0_38], %62 {strides = array<i32>} : memref<2x128xf32, #tpu.memory_space<vmem>>, vector<2x128xf32>,
      %cst_39 = arith.constant 0.000000e+00 : f32
      %64 = vector.broadcast %cst_39 : f32 to vector<2x128xf32>
      %c0_40 = arith.constant 0 : index
      %c0_41 = arith.constant 0 : index
      %65 = vector.load %arg6[%c0_40, %c0_41] : memref<2x128xf32, #tpu.memory_space<vmem>>, vector<2x128xf32>
      tpu.vector_store %arg6[%c0_40, %c0_41], %64 {strides = array<i32>} : memref<2x128xf32, #tpu.memory_space<vmem>>, vector<2x128xf32>,
    } else {
    }
    %cst = arith.constant 0.000000e+00 : f32
    %3 = vector.broadcast %cst : f32 to vector<2x128xf32>
    %cst_1 = arith.constant 0.000000e+00 : f32
    %4 = vector.broadcast %cst_1 : f32 to vector<2x128xf32>
    %c0 = arith.constant 0 : index
    %c0_2 = arith.constant 0 : index
    %5 = vector.load %arg2[%c0, %c0_2] : memref<2x1024xf32, #tpu.memory_space<vmem>>, vector<2x128xf32>
    %c0_3 = arith.constant 0 : index
    %c0_4 = arith.constant 0 : index
    %6 = vector.load %arg3[%c0_3, %c0_4] : memref<2x1024xf32, #tpu.memory_space<vmem>>, vector<2x128xf32>
    %7 = arith.mulf %5, %6 : vector<2x128xf32>
    %8 = arith.addf %3, %7 : vector<2x128xf32>
    %9 = arith.addf %5, %6 : vector<2x128xf32>
    %10 = arith.addf %4, %9 : vector<2x128xf32>
    %c0_5 = arith.constant 0 : index
    %c128 = arith.constant 128 : index
    %11 = vector.load %arg2[%c0_5, %c128] : memref<2x1024xf32, #tpu.memory_space<vmem>>, vector<2x128xf32>
    %c0_6 = arith.constant 0 : index
    %c128_7 = arith.constant 128 : index
    %12 = vector.load %arg3[%c0_6, %c128_7] : memref<2x1024xf32, #tpu.memory_space<vmem>>, vector<2x128xf32>
    %13 = arith.mulf %11, %12 : vector<2x128xf32>
    %14 = arith.addf %8, %13 : vector<2x128xf32>
    %15 = arith.addf %11, %12 : vector<2x128xf32>
    %16 = arith.addf %10, %15 : vector<2x128xf32>
    %c0_8 = arith.constant 0 : index
    %c256 = arith.constant 256 : index
    %17 = vector.load %arg2[%c0_8, %c256] : memref<2x1024xf32, #tpu.memory_space<vmem>>, vector<2x128xf32>
    %c0_9 = arith.constant 0 : index
    %c256_10 = arith.constant 256 : index
    %18 = vector.load %arg3[%c0_9, %c256_10] : memref<2x1024xf32, #tpu.memory_space<vmem>>, vector<2x128xf32>
    %19 = arith.mulf %17, %18 : vector<2x128xf32>
    %20 = arith.addf %14, %19 : vector<2x128xf32>
    %21 = arith.addf %17, %18 : vector<2x128xf32>
    %22 = arith.addf %16, %21 : vector<2x128xf32>
    %c0_11 = arith.constant 0 : index
    %c384 = arith.constant 384 : index
    %23 = vector.load %arg2[%c0_11, %c384] : memref<2x1024xf32, #tpu.memory_space<vmem>>, vector<2x128xf32>
    %c0_12 = arith.constant 0 : index
    %c384_13 = arith.constant 384 : index
    %24 = vector.load %arg3[%c0_12, %c384_13] : memref<2x1024xf32, #tpu.memory_space<vmem>>, vector<2x128xf32>
    %25 = arith.mulf %23, %24 : vector<2x128xf32>
    %26 = arith.addf %20, %25 : vector<2x128xf32>
    %27 = arith.addf %23, %24 : vector<2x128xf32>
    %28 = arith.addf %22, %27 : vector<2x128xf32>
    %c0_14 = arith.constant 0 : index
    %c512 = arith.constant 512 : index
    %29 = vector.load %arg2[%c0_14, %c512] : memref<2x1024xf32, #tpu.memory_space<vmem>>, vector<2x128xf32>
    %c0_15 = arith.constant 0 : index
    %c512_16 = arith.constant 512 : index
    %30 = vector.load %arg3[%c0_15, %c512_16] : memref<2x1024xf32, #tpu.memory_space<vmem>>, vector<2x128xf32>
    %31 = arith.mulf %29, %30 : vector<2x128xf32>
    %32 = arith.addf %26, %31 : vector<2x128xf32>
    %33 = arith.addf %29, %30 : vector<2x128xf32>
    %34 = arith.addf %28, %33 : vector<2x128xf32>
    %c0_17 = arith.constant 0 : index
    %c640 = arith.constant 640 : index
    %35 = vector.load %arg2[%c0_17, %c640] : memref<2x1024xf32, #tpu.memory_space<vmem>>, vector<2x128xf32>
    %c0_18 = arith.constant 0 : index
    %c640_19 = arith.constant 640 : index
    %36 = vector.load %arg3[%c0_18, %c640_19] : memref<2x1024xf32, #tpu.memory_space<vmem>>, vector<2x128xf32>
    %37 = arith.mulf %35, %36 : vector<2x128xf32>
    %38 = arith.addf %32, %37 : vector<2x128xf32>
    %39 = arith.addf %35, %36 : vector<2x128xf32>
    %40 = arith.addf %34, %39 : vector<2x128xf32>
    %c0_20 = arith.constant 0 : index
    %c768 = arith.constant 768 : index
    %41 = vector.load %arg2[%c0_20, %c768] : memref<2x1024xf32, #tpu.memory_space<vmem>>, vector<2x128xf32>
    %c0_21 = arith.constant 0 : index
    %c768_22 = arith.constant 768 : index
    %42 = vector.load %arg3[%c0_21, %c768_22] : memref<2x1024xf32, #tpu.memory_space<vmem>>, vector<2x128xf32>
    %43 = arith.mulf %41, %42 : vector<2x128xf32>
    %44 = arith.addf %38, %43 : vector<2x128xf32>
    %45 = arith.addf %41, %42 : vector<2x128xf32>
    %46 = arith.addf %40, %45 : vector<2x128xf32>
    %c0_23 = arith.constant 0 : index
    %c896 = arith.constant 896 : index
    %47 = vector.load %arg2[%c0_23, %c896] : memref<2x1024xf32, #tpu.memory_space<vmem>>, vector<2x128xf32>
    %c0_24 = arith.constant 0 : index
    %c896_25 = arith.constant 896 : index
    %48 = vector.load %arg3[%c0_24, %c896_25] : memref<2x1024xf32, #tpu.memory_space<vmem>>, vector<2x128xf32>
    %49 = arith.mulf %47, %48 : vector<2x128xf32>
    %50 = arith.addf %44, %49 : vector<2x128xf32>
    %51 = arith.addf %47, %48 : vector<2x128xf32>
    %52 = arith.addf %46, %51 : vector<2x128xf32>
    %c0_26 = arith.constant 0 : index
    %c0_27 = arith.constant 0 : index
    %53 = vector.load %arg5[%c0_26, %c0_27] : memref<2x128xf32, #tpu.memory_space<vmem>>, vector<2x128xf32>
    %54 = arith.addf %53, %50 : vector<2x128xf32>
    %c0_28 = arith.constant 0 : index
    %c0_29 = arith.constant 0 : index
    %55 = vector.load %arg5[%c0_28, %c0_29] : memref<2x128xf32, #tpu.memory_space<vmem>>, vector<2x128xf32>
    tpu.vector_store %arg5[%c0_28, %c0_29], %54 {strides = array<i32>} : memref<2x128xf32, #tpu.memory_space<vmem>>, vector<2x128xf32>,
    %c0_30 = arith.constant 0 : index
    %c0_31 = arith.constant 0 : index
    %56 = vector.load %arg6[%c0_30, %c0_31] : memref<2x128xf32, #tpu.memory_space<vmem>>, vector<2x128xf32>
    %57 = arith.addf %56, %52 : vector<2x128xf32>
    %c0_32 = arith.constant 0 : index
    %c0_33 = arith.constant 0 : index
    %58 = vector.load %arg6[%c0_32, %c0_33] : memref<2x128xf32, #tpu.memory_space<vmem>>, vector<2x128xf32>
    tpu.vector_store %arg6[%c0_32, %c0_33], %57 {strides = array<i32>} : memref<2x128xf32, #tpu.memory_space<vmem>>, vector<2x128xf32>,
    %c0_i32_34 = arith.constant 0 : i32
    %59 = arith.cmpi eq, %arg1, %c0_i32_34 : i32
    %60 = arith.extui %59 : i1 to i32
    %c0_i32_35 = arith.constant 0 : i32
    %61 = arith.cmpi ne, %60, %c0_i32_35 : i32
    scf.if %61 {
      %c0_36 = arith.constant 0 : index
      %c0_37 = arith.constant 0 : index
      %62 = vector.load %arg5[%c0_36, %c0_37] : memref<2x128xf32, #tpu.memory_space<vmem>>, vector<2x128xf32>
      %cst_38 = arith.constant dense<0.000000e+00> : vector<2xf32>
      %63 = vector.multi_reduction <add>, %62, %cst_38 [1] : vector<2x128xf32> to vector<2xf32>
      %64 = vector.shape_cast %63 : vector<2xf32> to vector<2x1xf32>
      %c0_39 = arith.constant 0 : index
      %c0_40 = arith.constant 0 : index
      %65 = vector.load %arg6[%c0_39, %c0_40] : memref<2x128xf32, #tpu.memory_space<vmem>>, vector<2x128xf32>
      %cst_41 = arith.constant dense<0.000000e+00> : vector<2xf32>
      %66 = vector.multi_reduction <add>, %65, %cst_41 [1] : vector<2x128xf32> to vector<2xf32>
      %67 = vector.shape_cast %66 : vector<2xf32> to vector<2x1xf32>
      %cst_42 = arith.constant 1.000000e+00 : f32
      %68 = vector.broadcast %cst_42 : f32 to vector<2x1xf32>
      %69 = arith.addf %64, %68 : vector<2x1xf32>
      %cst_43 = arith.constant 2.000000e+00 : f32
      %70 = vector.broadcast %cst_43 : f32 to vector<2x1xf32>
      %71 = arith.mulf %70, %69 : vector<2x1xf32>
      %cst_44 = arith.constant 1.000000e+00 : f32
      %72 = vector.broadcast %cst_44 : f32 to vector<2x1xf32>
      %73 = arith.addf %67, %72 : vector<2x1xf32>
      %74 = arith.divf %71, %73 : vector<2x1xf32>
      %c0_45 = arith.constant 0 : index
      %c0_46 = arith.constant 0 : index
      %75 = vector.load %arg4[%c0_45, %c0_46] : memref<2x1xf32, #tpu.memory_space<vmem>>, vector<2x1xf32>
      tpu.vector_store %arg4[%c0_45, %c0_46], %74 {strides = array<i32>} : memref<2x1xf32, #tpu.memory_space<vmem>>, vector<2x1xf32>,
    } else {
    }
    return
  }
  func.func @transform_0(%arg0: i32, %arg1: i32) -> (i32, i32) {
    %c0_i32 = arith.constant 0 : i32
    return %arg0, %arg1 : i32, i32
  }
  func.func @transform_1(%arg0: i32, %arg1: i32) -> (i32, i32) {
    %c0_i32 = arith.constant 0 : i32
    return %arg0, %arg1 : i32, i32
  }
  func.func @transform_2(%arg0: i32, %arg1: i32) -> (i32, i32) {
    %c0_i32 = arith.constant 0 : i32
    %c0_i32_0 = arith.constant 0 : i32
    return %arg0, %c0_i32 : i32, i32
  }
}

</mosaic_0001>

<bundles_post_ra>
// kernel: tpu_custom_call.1
= control target key start
LH: loop header
LB: loop body
LE: loop exit
PB: predicated region body
PF: predicated region fallthrough
CT: control target
= control target key end

     0   :  { %7 = vsyncpa [#allocation5], 0  ;;  %s221_s0 = inlined_call_operand.hbm [shape: f32[2,1024], index: 0, kind: input, shape index: {}]   ;;  %s222_s1 = inlined_call_operand.hbm [shape: f32[2,1024], index: 1, kind: input, shape index: {}]   ;;  %s223_s2 = inlined_call_operand.vmem [shape: f32[2,1], index: 2, kind: output, shape index: {}]  }
   0x1   :  { %s14_s11 = sshll.u32 %s221_s0, 4  ;;  %s15_s11 = int_to_ptr.hbm [resolvable:$true] %s14_s11 }
   0x2   :  { %8 = vsyncpa [#allocation7], 0  ;;  %s194_s12 = smov [#allocation4]   ;;  %s25_s16 = sshll.u32 %s222_s1, 4  ;;  %s26_s16 = int_to_ptr.hbm [resolvable:$true] %s25_s16 }
   0x3   :  { %s16_s13 = sshll.u32 %s194_s12, 4  ;;  %s195_s17 = smov [#allocation6]   ;;  %s17_s13 = int_to_ptr.vmem [resolvable:$true] %s16_s13 }
   0x4   :  { %19 = dma.hbm_to_vmem [thread:$0]  %s15_s11, 256, %s17_s13, [#allocation5]  }
   0x5   :  { %s27_s18 = sshll.u32 %s195_s17, 4  ;;  %s28_s18 = int_to_ptr.vmem [resolvable:$true] %s27_s18 }
   0x6   :  { %30 = dma.hbm_to_vmem [thread:$0]  %s26_s16, 256, %s28_s18, [#allocation7]  }
   0x7   :  { %190 = dma.done.wait [#allocation5], 256  }
   0x8   :  { %191 = vsyncadd [#allocation5], 4294967040 }
   0x9   :  { %192 = dma.done.wait [#allocation7], 256  }
   0xa   :  { %193 = vsyncadd [#allocation7], 4294967040  ;;  %v196_v0 = vmov 0.0   ;;  %v45_v1 = vld [vmem:[#allocation4] sm:$0x3]  ;;  %vm103_vm0 = vcmask 1041408  }
   0xb   :  { %44 = vst [vmem:[#allocation3] sm:$0x3] %v196_v0  ;;  %v46_v2 = vld [vmem:[#allocation6] sm:$0x3]  ;;  %v51_v3 = vld [vmem:[#allocation4 + $0x2] sm:$0x3] }
   0xc   :  { %43 = vst [vmem:[#allocation2] sm:$0x3] %v196_v0  ;;  %v49_v4 = vadd.f32 %v46_v2, %v45_v1  ;;  %v52_v5 = vld [vmem:[#allocation6 + $0x2] sm:$0x3]  ;;  %v57_v6 = vld [vmem:[#allocation4 + $0x4] sm:$0x3]  ;;  %v47_v8 = vmul.f32 %v46_v2, %v45_v1 }
   0xd   :  { %v58_v7 = vld [vmem:[#allocation6 + $0x4] sm:$0x3]  ;;  %v55_v9 = vadd.f32 %v52_v5, %v51_v3  ;;  %v63_v11 = vld [vmem:[#allocation4 + $0x6] sm:$0x3]  ;;  %v64_v12 = vld [vmem:[#allocation6 + $0x6] sm:$0x3]  ;;  %v53_v13 = vmul.f32 %v52_v5, %v51_v3 }
   0xe   :  { %v61_v10 = vadd.f32 %v58_v7, %v57_v6  ;;  %v59_v14 = vmul.f32 %v58_v7, %v57_v6  ;;  %v69_v15 = vld [vmem:[#allocation4 + $0x8] sm:$0x3]  ;;  %v70_v16 = vld [vmem:[#allocation6 + $0x8] sm:$0x3]  ;;  %v67_v18 = vadd.f32 %v64_v12, %v63_v11  ;;  %v65_v20 = vmul.f32 %v64_v12, %v63_v11  ;;  %v75_v21 = vld [vmem:[#allocation4 + $0xa] sm:$0x3] }
   0xf   :  { %v56_v17 = vadd.f32 %v55_v9, %v49_v4  ;;  %v54_v19 = vadd.f32 %v53_v13, %v47_v8  ;;  %v76_v22 = vld [vmem:[#allocation6 + $0xa] sm:$0x3]  ;;  %v73_v24 = vadd.f32 %v70_v16, %v69_v15  ;;  %v71_v26 = vmul.f32 %v70_v16, %v69_v15  ;;  %v81_v27 = vld [vmem:[#allocation4 + $0xc] sm:$0x3]  ;;  %v82_v28 = vld [vmem:[#allocation6 + $0xc] sm:$0x3] }
  0x10   :  { %v79_v30 = vadd.f32 %v76_v22, %v75_v21  ;;  %v77_v32 = vmul.f32 %v76_v22, %v75_v21  ;;  %v87_v33 = vld [vmem:[#allocation4 + $0xe] sm:$0x3]  ;;  %v88_v34 = vld [vmem:[#allocation6 + $0xe] sm:$0x3]  ;;  %v85_v36 = vadd.f32 %v82_v28, %v81_v27  ;;  %v83_v38 = vmul.f32 %v82_v28, %v81_v27 }
  0x11   :  { %v62_v23 = vadd.f32 %v61_v10, %v56_v17  ;;  %v60_v25 = vadd.f32 %v59_v14, %v54_v19  ;;  %v91_v40 = vadd.f32 %v88_v34, %v87_v33  ;;  %v89_v42 = vmul.f32 %v88_v34, %v87_v33 }
  0x12   :  { %v96_v45 = vld [vmem:[#allocation3] sm:$0x3]  ;;  %vm129_vm5 = vcmask 1024  }
  0x13   :  { %v68_v29 = vadd.f32 %v67_v18, %v62_v23  ;;  %v66_v31 = vadd.f32 %v65_v20, %v60_v25  ;;  %v93_v46 = vld [vmem:[#allocation2] sm:$0x3] }
  0x15   :  { %v74_v35 = vadd.f32 %v73_v24, %v68_v29  ;;  %v72_v37 = vadd.f32 %v71_v26, %v66_v31 }
  0x17   :  { %v80_v39 = vadd.f32 %v79_v30, %v74_v35  ;;  %v78_v41 = vadd.f32 %v77_v32, %v72_v37 }
  0x19   :  { %v86_v43 = vadd.f32 %v85_v36, %v80_v39  ;;  %v84_v44 = vadd.f32 %v83_v38, %v78_v41 }
  0x1b   :  { %v92_v47 = vadd.f32 %v91_v40, %v86_v43  ;;  %v90_v48 = vadd.f32 %v89_v42, %v84_v44 }
  0x1d   :  { %v97_v49 = vadd.f32 %v96_v45, %v92_v47  ;;  %v94_v50 = vadd.f32 %v93_v46, %v90_v48 }
  0x1f   :  { %98 = vst [vmem:[#allocation3] sm:$0x3] %v97_v49 }
  0x20   :  { %95 = vst [vmem:[#allocation2] sm:$0x3] %v94_v50 }
  0x26   :  { %v107_v51 = vld [vmem:[#allocation3] sm:$0x3] }
  0x27   :  { %v108_v52 = vsel %vm103_vm0, %v107_v51, 0.0  ;;  %v102_v53 = vld [vmem:[#allocation2] sm:$0x3] }
  0x28   :  { %109 = vadd.xlane.f32.xlu0 %v108_v52  ;;  %v104_v54 = vsel %vm103_vm0, %v102_v53, 0.0 }
  0x30   :  { %105 = vadd.xlane.f32.xlu0 %v104_v54 }
  0x9b   :  { %v110_v55 = vpop.xlane.xlu0 %109 }
  0x9c   :  { %v113_v56 = vadd.f32 1.0, %v110_v55 }
  0x9e   :  { %140 = vrcp.f32 %v113_v56  ;;  %v125_v62 = vand.u32 2147483648, %v113_v56  ;;  %v123_v0 = vand.u32 2147483647, %v113_v56  ;;  %vm119_vm2 = vweird.f32 %v113_v56 }
  0xa0   :  { %v126_v3 = vor.u32 1.1754944e-38, %v125_v62  ;;  %vm124_vm4 = vcmp.eq.f32.partialorder %v123_v0, 8.507059e+37 }
  0xa3   :  { %v106_v58 = vpop.xlane.xlu0 %105 }
  0xa4   :  { %v141_v57 = vpop.eup %140  ;;  %v111_v61 = vadd.f32 1.0, %v106_v58 }
  0xa5   :  { %v115_v59 = vmul.f32 %v141_v57, %v113_v56  ;;  %vm120_vm1 = vweird.f32 %v141_v57 }
  0xa6   :  { %v112_v2 = vmul.f32 2.0, %v111_v61  ;;  %vm121_vm3 = vmor %vm119_vm2, %vm120_vm1 }
  0xa7   :  { %v116_v60 = vsub.f32 1.0, %v115_v59 }
  0xa9   :  { %v117_v63 = vmul.f32 %v141_v57, %v116_v60 }
  0xab   :  { %v118_v1 = vadd.f32 %v141_v57, %v117_v63 }
  0xad   :  { %v122_v4 = vsel %vm121_vm3, %v141_v57, %v118_v1 }
  0xae   :  { %v127_v5 = vsel %vm124_vm4, %v126_v3, %v122_v4 }
  0xaf   :  { %v128_v6 = vmul.f32 %v127_v5, %v112_v2 }
  0xb1   :  { %130 = vst.msk [vmem:[%s223_s2] sm:$0x3] %vm129_vm5, %v128_v6 }
  0xb2   :  { %135 = vsyncpa [#allocation5], 1 }
  0xb3   :  { %136 = vsyncpa [#allocation7], 1 }

</bundles_post_ra>
